<compile_context>
chip_gen: v7x
topology: tpu7x:2x2x1
jax: 0.10.0
libtpu: 0.0.40
codegen_flags: <defaults>
</compile_context>

<pallas_src>
import functools

import jax
import jax.numpy as jnp
from jax import lax
from jax.experimental import pallas as pl
from jax.experimental.pallas import tpu as pltpu

BN_EPS = 1e-5


# --------------------------- host-side weight re-layout ---------------------------
def _band_toeplitz(w_oihw, W):
    """Conv weights (Cout, Cin, 3, 3) -> fused banded matmul weights (3*W*Cin, W*Cout).

    For kernel row ky, block T_ky with
      T_ky[(w+kx-1)*Cin + ci, w*Cout + co] = w_oihw[co, ci, ky, kx]
    (entries with w+kx-1 outside [0, W) are absent -> implicit zero padding along
    the W axis).  The three ky bands are stacked along the contraction axis so the
    whole 3x3 conv becomes ONE matmul against [x(h-1) | x(h) | x(h+1)].
    """
    Cout, Cin = w_oihw.shape[0], w_oihw.shape[1]
    wt = jnp.transpose(w_oihw, (2, 3, 1, 0)).astype(jnp.float32)   # (ky, kx, Cin, Cout)
    T = jnp.zeros((3, W * Cin, W * Cout), jnp.float32)
    for ky in range(3):
        for kx in range(3):
            blk = wt[ky, kx]                                        # (Cin, Cout)
            for w in range(W):
                src = w + kx - 1
                if 0 <= src < W:
                    T = T.at[ky,
                             src * Cin:(src + 1) * Cin,
                             w * Cout:(w + 1) * Cout].set(blk)
    return T.reshape(3 * W * Cin, W * Cout)


# ------------------------------------ kernel --------------------------------------
def _block_kernel(x_ref, t1_ref, g1_ref, bb1_ref, t2_ref, g2_ref, bb2_ref,
                  sel_ref, bcast_ref, o_ref, *, B, H):
    """Fused: relu(bn(conv3x3(x))) -> relu(bn(conv3x3(.)))   (one pallas_call).

    x_ref    : (B*H, W*Cin)             lane-dense input slab (NHWC with W,C in lanes)
    t*_ref   : (3*W*Cin_s, W*Cout)      stacked banded conv weights
    g*_ref   : (1, Cout)                BN gamma
    bb*_ref  : (1, Cout)                BN beta
    sel_ref  : (W*Cout, Cout)           lane->channel reduction matrix, pre-scaled by 1/N
    bcast_ref: (Cout, W*Cout)           channel->lane broadcast matrix
    o_ref    : (B*H, W*Cout)            lane-dense output
    """
    BH = B * H

    # Row masks for the H halo: zero the h==0 row of x(h-1) and the h==H-1 row of
    # x(h+1); this also removes the cross-batch wraparound introduced by the roll.
    h_idx = lax.broadcasted_iota(jnp.int32, (BH, 1), 0) % H
    top_m = (h_idx != 0).astype(jnp.float32)          # row above exists
    bot_m = (h_idx != (H - 1)).astype(jnp.float32)    # row below exists

    def stage(slab, t_ref, g_ref, bb_ref):
        # --- 3x3 conv as ONE MXU matmul (W/kx halo folded into the weights) ---
        up = pltpu.roll(slab, 1, 0) * top_m           # x[b, h-1]  (masked at h==0)
        dn = pltpu.roll(slab, BH - 1, 0) * bot_m      # x[b, h+1]  (masked at h==H-1)
        lhs = jnp.concatenate([up, slab, dn], axis=-1)              # (BH, 3*W*C)
        acc = jnp.dot(lhs, t_ref[...], preferred_element_type=jnp.float32)

        # --- BatchNorm (train-mode batch stats), single traversal, f32 ---
        s1 = jnp.sum(acc, axis=0, keepdims=True)                    # (1, W*Cout)
        s2 = jnp.sum(acc * acc, axis=0, keepdims=True)              # (1, W*Cout)
        s12 = jnp.concatenate([s1, s2], axis=0)                     # (2, W*Cout)
        ms = jnp.dot(s12, sel_ref[...],
                     preferred_element_type=jnp.float32)            # (2, Cout) = [mean; E[x^2]]
        mean = ms[0:1, :]
        var = ms[1:2, :] - mean * mean                              # biased variance
        scale = g_ref[...] * lax.rsqrt(var + BN_EPS)                # (1, Cout)
        shift = bb_ref[...] - mean * scale                          # (1, Cout)
        ss = jnp.concatenate([scale, shift], axis=0)                # (2, Cout)
        ssl = jnp.dot(ss, bcast_ref[...],
                      preferred_element_type=jnp.float32)           # (2, W*Cout)

        # --- affine + ReLU ---
        return jnp.maximum(acc * ssl[0:1, :] + ssl[1:2, :], 0.0)    # (BH, W*Cout)

    # Stage 1, then stage 2 on the VMEM-resident intermediate (no HBM round trip).
    y1 = stage(x_ref[...], t1_ref, g1_ref, bb1_ref)
    o_ref[...] = stage(y1, t2_ref, g2_ref, bb2_ref)


# ------------------------------------ wrapper --------------------------------------
def block_forward(x_nchw, params):
    """Equivalent of Block.forward: relu(bn1(conv1(x))) -> relu(bn2(conv2(.)))."""
    B, Cin, H, W = x_nchw.shape
    Cout = params["w1"].shape[0]

    # Layout glue (host / XLA side): NCHW -> lane-dense (B*H, W*Cin) slab.
    x2d = jnp.transpose(x_nchw, (0, 2, 3, 1)).reshape(B * H, W * Cin)

    # NOTE: conv biases b1/b2 are intentionally NOT passed to the kernel — a
    # per-channel bias added before train-mode BatchNorm is exactly cancelled
    # by the mean subtraction, so the forward output is unchanged.
    T1 = _band_toeplitz(params["w1"], W)                            # (3*W*Cin,  W*Cout)
    T2 = _band_toeplitz(params["w2"], W)                            # (3*W*Cout, W*Cout)
    g1 = params["g1"].reshape(1, Cout)
    bb1 = params["beta1"].reshape(1, Cout)
    g2 = params["g2"].reshape(1, Cout)
    bb2 = params["beta2"].reshape(1, Cout)
    inv_n = 1.0 / float(B * H * W)
    eye = jnp.eye(Cout, dtype=jnp.float32)
    sel = jnp.tile(eye, (W, 1)) * inv_n                             # (W*Cout, Cout), 1/N folded
    bcast = jnp.tile(eye, (W, 1)).T                                 # (Cout, W*Cout)

    kernel = functools.partial(_block_kernel, B=B, H=H)
    out2d = pl.pallas_call(
        kernel,
        out_shape=jax.ShapeDtypeStruct((B * H, W * Cout), jnp.float32),
        in_specs=[pl.BlockSpec(memory_space=pltpu.MemorySpace.VMEM)] * 9,
        out_specs=pl.BlockSpec(memory_space=pltpu.MemorySpace.VMEM),
    )(x2d, T1, g1, bb1, T2, g2, bb2, sel, bcast)

    out = out2d.reshape(B, H, W, Cout)                              # lane-dense -> NHWC
    return jnp.transpose(out, (0, 3, 1, 2))                         # NHWC -> NCHW


# ----------------------- pure-JAX reference (for checking) -----------------------
def _ref_stage(x_nchw, w, b, g, beta):
    y = lax.conv_general_dilated(
        x_nchw, w, window_strides=(1, 1), padding=((1, 1), (1, 1)),
        dimension_numbers=("NCHW", "OIHW", "NCHW"))
    y = y + b[None, :, None, None]
    mean = jnp.mean(y, axis=(0, 2, 3), keepdims=True)
    var = jnp.mean((y - mean) ** 2, axis=(0, 2, 3), keepdims=True)
    y = (y - mean) * lax.rsqrt(var + BN_EPS)
    y = y * g[None, :, None, None] + beta[None, :, None, None]
    return jnp.maximum(y, 0.0)


def block_forward_ref(x_nchw, p):
    y = _ref_stage(x_nchw, p["w1"], p["b1"], p["g1"], p["beta1"])
    y = _ref_stage(y, p["w2"], p["b2"], p["g2"], p["beta2"])
    return y


if __name__ == "__main__":
    B, C_IN, C_OUT, H, W = 2, 4, 8, 16, 16

    key = jax.random.PRNGKey(0)
    ks = jax.random.split(key, 9)

    # Deterministic synthetic parameters (shapes match nn.Conv2d / nn.BatchNorm2d).
    params = {
        "w1": jax.random.normal(ks[0], (C_OUT, C_IN, 3, 3), jnp.float32) * 0.1,
        "b1": jax.random.normal(ks[1], (C_OUT,), jnp.float32) * 0.1,
        "g1": 1.0 + 0.1 * jax.random.normal(ks[2], (C_OUT,), jnp.float32),
        "beta1": 0.1 * jax.random.normal(ks[3], (C_OUT,), jnp.float32),
        "w2": jax.random.normal(ks[4], (C_OUT, C_OUT, 3, 3), jnp.float32) * 0.1,
        "b2": jax.random.normal(ks[5], (C_OUT,), jnp.float32) * 0.1,
        "g2": 1.0 + 0.1 * jax.random.normal(ks[6], (C_OUT,), jnp.float32),
        "beta2": 0.1 * jax.random.normal(ks[7], (C_OUT,), jnp.float32),
    }
    x = jax.random.normal(ks[8], (B, C_IN, H, W), jnp.float32)   # NCHW like PyTorch

    out = jax.block_until_ready(block_forward(x, params))
    ref = jax.block_until_ready(block_forward_ref(x, params))

    assert out.shape == (B, C_OUT, H, W), out.shape
    assert jnp.allclose(out, ref, rtol=2e-4, atol=2e-4), float(jnp.max(jnp.abs(out - ref)))
    print("KERNEL_OK")
</pallas_src>

<mosaic_0001>
module attributes {stable_mosaic.version = 11 : i64} {
  func.func @_block_kernel(%arg0: memref<32x64xf32, #tpu.memory_space<vmem>>, %arg1: memref<192x128xf32, #tpu.memory_space<vmem>>, %arg2: memref<1x8xf32, #tpu.memory_space<vmem>>, %arg3: memref<1x8xf32, #tpu.memory_space<vmem>>, %arg4: memref<384x128xf32, #tpu.memory_space<vmem>>, %arg5: memref<1x8xf32, #tpu.memory_space<vmem>>, %arg6: memref<1x8xf32, #tpu.memory_space<vmem>>, %arg7: memref<128x8xf32, #tpu.memory_space<vmem>>, %arg8: memref<8x128xf32, #tpu.memory_space<vmem>>, %arg9: memref<32x128xf32, #tpu.memory_space<vmem>>) attributes {dimension_semantics = [], scalar_prefetch = 0 : i64, scratch_operands = 0 : i64, tpu.core_type = #tpu.core_type<tc>} {
    %0 = tpu.iota {dimensions = array<i32: 0>} : vector<32x1xi32>
    %c16_i32 = arith.constant 16 : i32
    %c0_i32 = arith.constant 0 : i32
    %1 = arith.cmpi eq, %c16_i32, %c0_i32 : i32
    %c1_i32 = arith.constant 1 : i32
    %2 = arith.select %1, %c1_i32, %c16_i32 : i32
    %3 = vector.broadcast %2 : i32 to vector<32x1xi32>
    %4 = arith.remsi %0, %3 : vector<32x1xi32>
    %c0_i32_0 = arith.constant 0 : i32
    %5 = vector.broadcast %c0_i32_0 : i32 to vector<32x1xi32>
    %6 = arith.cmpi ne, %4, %5 : vector<32x1xi32>
    %c0_i32_1 = arith.constant 0 : i32
    %7 = vector.broadcast %c0_i32_1 : i32 to vector<32x1xi32>
    %8 = arith.cmpi slt, %4, %7 : vector<32x1xi32>
    %c0_i32_2 = arith.constant 0 : i32
    %9 = arith.cmpi slt, %2, %c0_i32_2 : i32
    %10 = vector.broadcast %9 : i1 to vector<32x1xi1>
    %11 = vector.broadcast %10 : vector<32x1xi1> to vector<32x1xi1>
    %12 = arith.xori %8, %11 : vector<32x1xi1>
    %13 = arith.andi %12, %6 : vector<32x1xi1>
    %14 = vector.broadcast %2 : i32 to vector<32x1xi32>
    %15 = arith.addi %4, %14 : vector<32x1xi32>
    %16 = arith.select %13, %15, %4 : vector<32x1xi1>, vector<32x1xi32>
    %c0_i32_3 = arith.constant 0 : i32
    %17 = vector.broadcast %c0_i32_3 : i32 to vector<32x1xi32>
    %18 = arith.cmpi ne, %16, %17 : vector<32x1xi32>
    %19 = arith.extui %18 : vector<32x1xi1> to vector<32x1xi32>
    %20 = arith.sitofp %19 : vector<32x1xi32> to vector<32x1xf32>
    %c15_i32 = arith.constant 15 : i32
    %21 = vector.broadcast %c15_i32 : i32 to vector<32x1xi32>
    %22 = arith.cmpi ne, %16, %21 : vector<32x1xi32>
    %23 = arith.extui %22 : vector<32x1xi1> to vector<32x1xi32>
    %24 = arith.sitofp %23 : vector<32x1xi32> to vector<32x1xf32>
    %c0 = arith.constant 0 : index
    %c0_4 = arith.constant 0 : index
    %25 = vector.load %arg0[%c0, %c0_4] : memref<32x64xf32, #tpu.memory_space<vmem>>, vector<32x64xf32>
    %c1_i32_5 = arith.constant 1 : i32
    %26 = tpu.dynamic_rotate %25 by %c1_i32_5 dim 0 : vector<32x64xf32>, i32 -> vector<32x64xf32>
    %27 = vector.broadcast %20 : vector<32x1xf32> to vector<32x64xf32>
    %28 = arith.mulf %26, %27 : vector<32x64xf32>
    %c31_i32 = arith.constant 31 : i32
    %29 = tpu.dynamic_rotate %25 by %c31_i32 dim 0 : vector<32x64xf32>, i32 -> vector<32x64xf32>
    %30 = vector.broadcast %24 : vector<32x1xf32> to vector<32x64xf32>
    %31 = arith.mulf %29, %30 : vector<32x64xf32>
    %32 = tpu.concatenate %28, %25, %31 in 1 : vector<32x64xf32>, vector<32x64xf32>, vector<32x64xf32> -> vector<32x192xf32>
    %c0_6 = arith.constant 0 : index
    %c0_7 = arith.constant 0 : index
    %33 = vector.load %arg1[%c0_6, %c0_7] : memref<192x128xf32, #tpu.memory_space<vmem>>, vector<192x128xf32>
    %cst = arith.constant dense<0.000000e+00> : vector<32x128xf32>
    %34 = tpu.matmul %32, %33, %cst {dimension_numbers = #tpu.dot_dimension_numbers<[1], [0], [0], [1], [0, 0, 1, 1], [], []>} : vector<32x192xf32>, vector<192x128xf32>, vector<32x128xf32> -> vector<32x128xf32>
    %cst_8 = arith.constant dense<0.000000e+00> : vector<128xf32>
    %35 = vector.multi_reduction <add>, %34, %cst_8 [0] : vector<32x128xf32> to vector<128xf32>
    %36 = vector.shape_cast %35 : vector<128xf32> to vector<1x128xf32>
    %37 = arith.mulf %34, %34 : vector<32x128xf32>
    %cst_9 = arith.constant dense<0.000000e+00> : vector<128xf32>
    %38 = vector.multi_reduction <add>, %37, %cst_9 [0] : vector<32x128xf32> to vector<128xf32>
    %39 = vector.shape_cast %38 : vector<128xf32> to vector<1x128xf32>
    %40 = tpu.concatenate %36, %39 in 0 : vector<1x128xf32>, vector<1x128xf32> -> vector<2x128xf32>
    %c0_10 = arith.constant 0 : index
    %c0_11 = arith.constant 0 : index
    %41 = vector.load %arg7[%c0_10, %c0_11] : memref<128x8xf32, #tpu.memory_space<vmem>>, vector<128x8xf32>
    %cst_12 = arith.constant dense<0.000000e+00> : vector<2x8xf32>
    %42 = tpu.matmul %40, %41, %cst_12 {dimension_numbers = #tpu.dot_dimension_numbers<[1], [0], [0], [1], [0, 0, 1, 1], [], []>} : vector<2x128xf32>, vector<128x8xf32>, vector<2x8xf32> -> vector<2x8xf32>
    %43 = vector.extract_strided_slice %42 {offsets = [0, 0], sizes = [1, 8], strides = [1, 1]} : vector<2x8xf32> to vector<1x8xf32>
    %44 = vector.extract_strided_slice %42 {offsets = [1, 0], sizes = [1, 8], strides = [1, 1]} : vector<2x8xf32> to vector<1x8xf32>
    %45 = arith.mulf %43, %43 : vector<1x8xf32>
    %46 = arith.subf %44, %45 : vector<1x8xf32>
    %c0_13 = arith.constant 0 : index
    %c0_14 = arith.constant 0 : index
    %47 = vector.load %arg2[%c0_13, %c0_14] : memref<1x8xf32, #tpu.memory_space<vmem>>, vector<1x8xf32>
    %cst_15 = arith.constant 9.99999974E-6 : f32
    %48 = vector.broadcast %cst_15 : f32 to vector<1x8xf32>
    %49 = arith.addf %46, %48 : vector<1x8xf32>
    %50 = math.rsqrt %49 : vector<1x8xf32>
    %51 = arith.mulf %47, %50 : vector<1x8xf32>
    %c0_16 = arith.constant 0 : index
    %c0_17 = arith.constant 0 : index
    %52 = vector.load %arg3[%c0_16, %c0_17] : memref<1x8xf32, #tpu.memory_space<vmem>>, vector<1x8xf32>
    %53 = arith.mulf %43, %51 : vector<1x8xf32>
    %54 = arith.subf %52, %53 : vector<1x8xf32>
    %55 = tpu.concatenate %51, %54 in 0 : vector<1x8xf32>, vector<1x8xf32> -> vector<2x8xf32>
    %c0_18 = arith.constant 0 : index
    %c0_19 = arith.constant 0 : index
    %56 = vector.load %arg8[%c0_18, %c0_19] : memref<8x128xf32, #tpu.memory_space<vmem>>, vector<8x128xf32>
    %cst_20 = arith.constant dense<0.000000e+00> : vector<2x128xf32>
    %57 = tpu.matmul %55, %56, %cst_20 {dimension_numbers = #tpu.dot_dimension_numbers<[1], [0], [0], [1], [0, 0, 1, 1], [], []>} : vector<2x8xf32>, vector<8x128xf32>, vector<2x128xf32> -> vector<2x128xf32>
    %58 = vector.extract_strided_slice %57 {offsets = [0, 0], sizes = [1, 128], strides = [1, 1]} : vector<2x128xf32> to vector<1x128xf32>
    %59 = vector.broadcast %58 : vector<1x128xf32> to vector<32x128xf32>
    %60 = arith.mulf %34, %59 : vector<32x128xf32>
    %61 = vector.extract_strided_slice %57 {offsets = [1, 0], sizes = [1, 128], strides = [1, 1]} : vector<2x128xf32> to vector<1x128xf32>
    %62 = vector.broadcast %61 : vector<1x128xf32> to vector<32x128xf32>
    %63 = arith.addf %60, %62 : vector<32x128xf32>
    %cst_21 = arith.constant 0.000000e+00 : f32
    %64 = vector.broadcast %cst_21 : f32 to vector<32x128xf32>
    %65 = arith.maximumf %63, %64 : vector<32x128xf32>
    %c1_i32_22 = arith.constant 1 : i32
    %66 = tpu.dynamic_rotate %65 by %c1_i32_22 dim 0 : vector<32x128xf32>, i32 -> vector<32x128xf32>
    %67 = vector.broadcast %20 : vector<32x1xf32> to vector<32x128xf32>
    %68 = arith.mulf %66, %67 : vector<32x128xf32>
    %c31_i32_23 = arith.constant 31 : i32
    %69 = tpu.dynamic_rotate %65 by %c31_i32_23 dim 0 : vector<32x128xf32>, i32 -> vector<32x128xf32>
    %70 = vector.broadcast %24 : vector<32x1xf32> to vector<32x128xf32>
    %71 = arith.mulf %69, %70 : vector<32x128xf32>
    %72 = tpu.concatenate %68, %65, %71 in 1 : vector<32x128xf32>, vector<32x128xf32>, vector<32x128xf32> -> vector<32x384xf32>
    %c0_24 = arith.constant 0 : index
    %c0_25 = arith.constant 0 : index
    %73 = vector.load %arg4[%c0_24, %c0_25] : memref<384x128xf32, #tpu.memory_space<vmem>>, vector<384x128xf32>
    %cst_26 = arith.constant dense<0.000000e+00> : vector<32x128xf32>
    %74 = tpu.matmul %72, %73, %cst_26 {dimension_numbers = #tpu.dot_dimension_numbers<[1], [0], [0], [1], [0, 0, 1, 1], [], []>} : vector<32x384xf32>, vector<384x128xf32>, vector<32x128xf32> -> vector<32x128xf32>
    %cst_27 = arith.constant dense<0.000000e+00> : vector<128xf32>
    %75 = vector.multi_reduction <add>, %74, %cst_27 [0] : vector<32x128xf32> to vector<128xf32>
    %76 = vector.shape_cast %75 : vector<128xf32> to vector<1x128xf32>
    %77 = arith.mulf %74, %74 : vector<32x128xf32>
    %cst_28 = arith.constant dense<0.000000e+00> : vector<128xf32>
    %78 = vector.multi_reduction <add>, %77, %cst_28 [0] : vector<32x128xf32> to vector<128xf32>
    %79 = vector.shape_cast %78 : vector<128xf32> to vector<1x128xf32>
    %80 = tpu.concatenate %76, %79 in 0 : vector<1x128xf32>, vector<1x128xf32> -> vector<2x128xf32>
    %c0_29 = arith.constant 0 : index
    %c0_30 = arith.constant 0 : index
    %81 = vector.load %arg7[%c0_29, %c0_30] : memref<128x8xf32, #tpu.memory_space<vmem>>, vector<128x8xf32>
    %cst_31 = arith.constant dense<0.000000e+00> : vector<2x8xf32>
    %82 = tpu.matmul %80, %81, %cst_31 {dimension_numbers = #tpu.dot_dimension_numbers<[1], [0], [0], [1], [0, 0, 1, 1], [], []>} : vector<2x128xf32>, vector<128x8xf32>, vector<2x8xf32> -> vector<2x8xf32>
    %83 = vector.extract_strided_slice %82 {offsets = [0, 0], sizes = [1, 8], strides = [1, 1]} : vector<2x8xf32> to vector<1x8xf32>
    %84 = vector.extract_strided_slice %82 {offsets = [1, 0], sizes = [1, 8], strides = [1, 1]} : vector<2x8xf32> to vector<1x8xf32>
    %85 = arith.mulf %83, %83 : vector<1x8xf32>
    %86 = arith.subf %84, %85 : vector<1x8xf32>
    %c0_32 = arith.constant 0 : index
    %c0_33 = arith.constant 0 : index
    %87 = vector.load %arg5[%c0_32, %c0_33] : memref<1x8xf32, #tpu.memory_space<vmem>>, vector<1x8xf32>
    %cst_34 = arith.constant 9.99999974E-6 : f32
    %88 = vector.broadcast %cst_34 : f32 to vector<1x8xf32>
    %89 = arith.addf %86, %88 : vector<1x8xf32>
    %90 = math.rsqrt %89 : vector<1x8xf32>
    %91 = arith.mulf %87, %90 : vector<1x8xf32>
    %c0_35 = arith.constant 0 : index
    %c0_36 = arith.constant 0 : index
    %92 = vector.load %arg6[%c0_35, %c0_36] : memref<1x8xf32, #tpu.memory_space<vmem>>, vector<1x8xf32>
    %93 = arith.mulf %83, %91 : vector<1x8xf32>
    %94 = arith.subf %92, %93 : vector<1x8xf32>
    %95 = tpu.concatenate %91, %94 in 0 : vector<1x8xf32>, vector<1x8xf32> -> vector<2x8xf32>
    %c0_37 = arith.constant 0 : index
    %c0_38 = arith.constant 0 : index
    %96 = vector.load %arg8[%c0_37, %c0_38] : memref<8x128xf32, #tpu.memory_space<vmem>>, vector<8x128xf32>
    %cst_39 = arith.constant dense<0.000000e+00> : vector<2x128xf32>
    %97 = tpu.matmul %95, %96, %cst_39 {dimension_numbers = #tpu.dot_dimension_numbers<[1], [0], [0], [1], [0, 0, 1, 1], [], []>} : vector<2x8xf32>, vector<8x128xf32>, vector<2x128xf32> -> vector<2x128xf32>
    %98 = vector.extract_strided_slice %97 {offsets = [0, 0], sizes = [1, 128], strides = [1, 1]} : vector<2x128xf32> to vector<1x128xf32>
    %99 = vector.broadcast %98 : vector<1x128xf32> to vector<32x128xf32>
    %100 = arith.mulf %74, %99 : vector<32x128xf32>
    %101 = vector.extract_strided_slice %97 {offsets = [1, 0], sizes = [1, 128], strides = [1, 1]} : vector<2x128xf32> to vector<1x128xf32>
    %102 = vector.broadcast %101 : vector<1x128xf32> to vector<32x128xf32>
    %103 = arith.addf %100, %102 : vector<32x128xf32>
    %cst_40 = arith.constant 0.000000e+00 : f32
    %104 = vector.broadcast %cst_40 : f32 to vector<32x128xf32>
    %105 = arith.maximumf %103, %104 : vector<32x128xf32>
    %c0_41 = arith.constant 0 : index
    %c0_42 = arith.constant 0 : index
    %106 = vector.load %arg9[%c0_41, %c0_42] : memref<32x128xf32, #tpu.memory_space<vmem>>, vector<32x128xf32>
    tpu.vector_store %arg9[%c0_41, %c0_42], %105 {strides = array<i32>} : memref<32x128xf32, #tpu.memory_space<vmem>>, vector<32x128xf32>,
    return
  }
}

</mosaic_0001>

<bundles_post_ra>
// kernel: tpu_custom_call.1
= control target key start
LH: loop header
LB: loop body
LE: loop exit
PB: predicated region body
PF: predicated region fallthrough
CT: control target
= control target key end

     0   :  { %14 = vsyncpa [#allocation3], 0  ;;  %s1893_s0 = inlined_call_operand.vmem [shape: f32[32,64], index: 0, kind: input, shape index: {}]   ;;  %s1894_s1 = inlined_call_operand.hbm [shape: f32[192,128], index: 1, kind: input, shape index: {}]   ;;  %s1895_s2 = inlined_call_operand.vmem [shape: f32[1,8], index: 2, kind: input, shape index: {}]   ;;  %s1896_s3 = inlined_call_operand.vmem [shape: f32[1,8], index: 3, kind: input, shape index: {}]   ;;  %s1897_s4 = inlined_call_operand.hbm [shape: f32[384,128], index: 4, kind: input, shape index: {}]   ;;  %s1898_s5 = inlined_call_operand.vmem [shape: f32[1,8], index: 5, kind: input, shape index: {}]   ;;  %s1899_s6 = inlined_call_operand.vmem [shape: f32[1,8], index: 6, kind: input, shape index: {}]   ;;  %s1900_s7 = inlined_call_operand.vmem [shape: f32[128,8], index: 7, kind: input, shape index: {}]   ;;  %s1901_s8 = inlined_call_operand.vmem [shape: f32[8,128], index: 8, kind: input, shape index: {}]   ;;  %s1902_s9 = inlined_call_operand.hbm [shape: f32[32,128], index: 9, kind: output, shape index: {}]  }
   0x1   :  { %15 = vsyncpa [#allocation6], 0 }
   0x2   :  { %16 = vsyncpa [#allocation4], 0  ;;  %s1501_s30 = smov [#allocation2]   ;;  %s1429_s13 = scalar_lea.hbm %s1894_s1, 3072 }
   0x3   :  { %s24_s10 = sshll.u32 %s1501_s30, 4  ;;  %p1430_p0 = scmp.ne.s32.totalorder %s1894_s1, %s1429_s13  ;;  %s25_s10 = int_to_ptr.vmem [resolvable:$true] %s24_s10 }
   0x4   :  { %p1433_p1 = scmp.lt.u32.totalorder %s1429_s13, %s1894_s1 }
   0x6   :  { %p1435_p2 = pnand %p1433_p1, %p1430_p0 }
   0x8   :  { %1438 = shalt.err (!%p1435_p2)
}
   0x9   :  { %s1439_s18 = scalar_lea.vmem %s25_s10, 3072  ;;  %p1444_p4 = scmp.lt.s32.totalorder %s25_s10, %s25_s10 }
   0xa   :  { %p1440_p3 = scmp.ne.s32.totalorder %s25_s10, %s1439_s18  ;;  %p1445_p5 = scmp.lt.s32.totalorder %s1439_s18, %s1439_s18 }
   0xc   :  { %p1446_p6 = por %p1445_p5, %p1444_p4 }
   0xe   :  { %p1447_p7 = pnand %p1446_p6, %p1440_p3 }
  0x10   :  { %1450 = shalt.err (!%p1447_p7)
}
  0x11   :  { %s1502_s19 = smov 128   ;;  %s1503_s20 = smov 8  }
  0x12   :  { %30 = dma.hbm_to_vmem [thread:$0]  %s1894_s1, 3072, %s25_s10, [#allocation3], %s1502_s19, %s1502_s19, %s1503_s20  }
  0x13   :  { %s1504_s23 = smov [#allocation5]   ;;  %s1451_s27 = scalar_lea.hbm %s1897_s4, 6144 }
  0x14   :  { %s40_s24 = sshll.u32 %s1504_s23, 4  ;;  %p1452_p8 = scmp.ne.s32.totalorder %s1897_s4, %s1451_s27  ;;  %s41_s24 = int_to_ptr.vmem [resolvable:$true] %s40_s24 }
  0x15   :  { %p1455_p9 = scmp.lt.u32.totalorder %s1451_s27, %s1897_s4 }
  0x17   :  { %p1457_p10 = pnand %p1455_p9, %p1452_p8 }
  0x19   :  { %1460 = shalt.err (!%p1457_p10)
}
  0x1a   :  { %s1461_s12 = scalar_lea.vmem %s41_s24, 6144  ;;  %p1466_p12 = scmp.lt.s32.totalorder %s41_s24, %s41_s24 }
  0x1b   :  { %p1462_p11 = scmp.ne.s32.totalorder %s41_s24, %s1461_s12  ;;  %p1467_p13 = scmp.lt.s32.totalorder %s1461_s12, %s1461_s12 }
  0x1d   :  { %p1468_p0 = por %p1467_p13, %p1466_p12 }
  0x1f   :  { %p1469_p1 = pnand %p1468_p0, %p1462_p11 }
  0x21   :  { %1472 = shalt.err (!%p1469_p1)
}
  0x22   :  { %46 = dma.hbm_to_vmem [thread:$0]  %s1897_s4, 6144, %s41_s24, [#allocation6], %s1502_s19, %s1502_s19, %s1503_s20  }
  0x23   :  { %1495 = dma.done.wait [#allocation3], 3072  }
  0x24   :  { %1496 = vsyncadd [#allocation3], 4294964224 }
  0x25   :  { %1497 = dma.done.wait [#allocation6], 6144  }
  0x26   :  { %1498 = vsyncadd [#allocation6], 4294961152  ;;  %v1505_v0 = vmov 0.0|0.0   ;;  %v61_v1 = vlaneseq  ;;  %v138_v3 = vld [vmem:[%s1893_s0] sm:$0xff]  ;;  %v139_v4 = vld [vmem:[%s1893_s0 + $0x8] sm:$0xff]  ;;  %vm184_vm1 = vcmask 523264  }
  0x27   :  { %1267 = vmatprep.subr.bf16.mxu0 %v1505_v0  ;;  %1303 = vmatprep.subr.bf16.mxu1 %v1505_v0  ;;  %v140_v5 = vld [vmem:[%s1893_s0 + $0x10] sm:$0xff]  ;;  %s1506_s18 = smov 64   ;;  %v142_v6 = vrot.slane %v138_v3, 7  ;;  %v155_v7 = vrot.slane %v138_v3, 1  ;;  %v143_v8 = vrot.slane %v139_v4, 7  ;;  %v156_v9 = vrot.slane %v139_v4, 1 }
  0x28   :  { %v1593_v2 = vshrl.u32 %v61_v1, 7  ;;  %172 = vrot.lane.b32.xlu0 %v138_v3, %s1506_s18  ;;  %176 = vrot.lane.b32.xlu1 %v140_v5, %s1506_s18  ;;  %v141_v10 = vld [vmem:[%s1893_s0 + $0x18] sm:$0xff]  ;;  %v189_v11 = vld [vmem:[#allocation2] sm:$0xff]  ;;  %v157_v12 = vrot.slane %v140_v5, 1  ;;  %v190_v15 = vld [vmem:[#allocation2 + $0x8] sm:$0xff]  ;;  %v144_v16 = vrot.slane %v140_v5, 7 }
  0x29   :  { %v145_v13 = vrot.slane %v141_v10, 7  ;;  %v158_v14 = vrot.slane %v141_v10, 1  ;;  %v1268_v17 = vpack.c.bf16 %v190_v15, %v189_v11  ;;  %v191_v18 = vld [vmem:[#allocation2 + $0x10] sm:$0xff]  ;;  %v192_v19 = vld [vmem:[#allocation2 + $0x18] sm:$0xff]  ;;  %v193_v26 = vld [vmem:[#allocation2 + $0x20] sm:$0xff]  ;;  %vm1508_vm7 = vmmov 0  }
  0x2a   :  { %vm159_vm0 = vcmp.lt.s32.totalorder %v1593_v2, 7  ;;  %vm146_vm2 = vcmp.lt.s32.totalorder %v1593_v2, 1  ;;  %v1271_v24 = vpack.c.bf16 %v192_v19, %v191_v18  ;;  %v194_v27 = vld [vmem:[#allocation2 + $0x28] sm:$0xff]  ;;  %v334_v32 = vld [vmem:[%s1900_s7] sm:$0xff]  ;;  %v195_v34 = vld [vmem:[#allocation2 + $0x30] sm:$0xff]  ;;  %v63_v62 = vadd.s32 8, %v1593_v2 }
  0x2b   :  { %v162_v20 = vsel %vm159_vm0, %v155_v7, %v156_v9  ;;  %v1613_v21 = vsel %vm146_vm2, %v142_v6, %v143_v8  ;;  %v1618_v22 = vsel %vm146_vm2, %v145_v13, %v142_v6  ;;  %v1622_v23 = vsel %vm159_vm0, %v156_v9, %v157_v12  ;;  %1269 = vmatpush1.bf16.msra.mxu0 %v1268_v17  ;;  %v335_v33 = vld [vmem:[%s1900_s7 + $0x8] sm:$0xff]  ;;  %v196_v35 = vld [vmem:[#allocation2 + $0x38] sm:$0xff]  ;;  %v197_v38 = vld [vmem:[#allocation2 + $0x40] sm:$0xff] }
  0x2c   :  { %1041 = vmatprep.mubr.msk.f32.mxu0 %vm184_vm1, %v162_v20  ;;  %174 = vrot.lane.b32.xlu0 %v139_v4, %s1506_s18  ;;  %v1626_v25 = vsel %vm159_vm0, %v157_v12, %v158_v14  ;;  %v1631_v28 = vsel %vm146_vm2, %v143_v8, %v144_v16  ;;  %v1635_v29 = vsel %vm159_vm0, %v158_v14, %v155_v7  ;;  %v198_v39 = vld [vmem:[#allocation2 + $0x48] sm:$0xff]  ;;  %v199_v41 = vld [vmem:[#allocation2 + $0x50] sm:$0xff]  ;;  %v200_v42 = vld [vmem:[#allocation2 + $0x58] sm:$0xff]  ;;  %v70_v63 = vand.u32 15, %v1593_v2 }
  0x2d   :  { %178 = vrot.lane.b32.xlu1 %v141_v10, %s1506_s18  ;;  %1270 = vmatprep.subr.bf16.mxu0 %v1505_v0  ;;  %v1639_v30 = vsel %vm146_vm2, %v144_v16, %v145_v13  ;;  %v1274_v31 = vpack.c.bf16 %v194_v27, %v193_v26  ;;  %v1648_v36 = vpack.c.bf16 %v335_v33, %v334_v32  ;;  %v201_v44 = vld [vmem:[#allocation2 + $0x60] sm:$0xff]  ;;  %v202_v45 = vld [vmem:[#allocation2 + $0x68] sm:$0xff]  ;;  %v203_v47 = vld [vmem:[#allocation2 + $0x70] sm:$0xff]  ;;  %v77_v1 = vand.u32 15, %v63_v62 }
  0x2e   :  { %v1277_v37 = vpack.c.bf16 %v196_v35, %v195_v34  ;;  %v1280_v40 = vpack.c.bf16 %v198_v39, %v197_v38  ;;  %v1283_v43 = vpack.c.bf16 %v200_v42, %v199_v41  ;;  %v1286_v46 = vpack.c.bf16 %v202_v45, %v201_v44  ;;  %v204_v48 = vld [vmem:[#allocation2 + $0x78] sm:$0xff]  ;;  %v205_v50 = vld [vmem:[#allocation2 + $0x80] sm:$0xff]  ;;  %v206_v51 = vld [vmem:[#allocation2 + $0x88] sm:$0xff] }
  0x2f   :  { %1272 = vmatpush1.bf16.msra.mxu0 %v1271_v24  ;;  %1305 = vmatpush3.bf16.msra.mxu1 %v1648_v36  ;;  %v1289_v49 = vpack.c.bf16 %v204_v48, %v203_v47  ;;  %v1292_v52 = vpack.c.bf16 %v206_v51, %v205_v50  ;;  %v207_v53 = vld [vmem:[#allocation2 + $0x90] sm:$0xff]  ;;  %v208_v54 = vld [vmem:[#allocation2 + $0x98] sm:$0xff]  ;;  %v209_v56 = vld [vmem:[#allocation2 + $0xa0] sm:$0xff]  ;;  %v64_v3 = vadd.s32 16, %v1593_v2  ;;  %vm114_vm3 = vcmp.ne.s32.totalorder %v70_v63, 0 }
  0x30   :  { %1273 = vmatprep.subr.bf16.mxu0 %v1505_v0  ;;  %1306 = vmatprep.subr.bf16.mxu1 %v1505_v0  ;;  %v1295_v55 = vpack.c.bf16 %v208_v54, %v207_v53  ;;  %v210_v57 = vld [vmem:[#allocation2 + $0xa8] sm:$0xff]  ;;  %v211_v59 = vld [vmem:[#allocation2 + $0xb0] sm:$0xff]  ;;  %v212_v60 = vld [vmem:[#allocation2 + $0xb8] sm:$0xff]  ;;  %vm127_vm4 = vcmp.ne.s32.totalorder %v77_v1, 15  ;;  %v65_v5 = vadd.s32 24, %v1593_v2  ;;  %v1507_v6 = vmov 0.0  }
  0x31   :  { %v1298_v58 = vpack.c.bf16 %v210_v57, %v209_v56  ;;  %v1301_v61 = vpack.c.bf16 %v212_v60, %v211_v59  ;;  %v84_v4 = vand.u32 15, %v64_v3  ;;  %v1666_v7 = vsel %vm114_vm3, 1.0, %v1507_v6  ;;  %v338_v27 = vld [vmem:[%s1900_s7 + $0x20] sm:$0xff]  ;;  %v343_v34 = vld [vmem:[%s1900_s7 + $0x48] sm:$0xff]  ;;  %v345_v38 = vld [vmem:[%s1900_s7 + $0x58] sm:$0xff]  ;;  %1181 = vmatprep.mubr.msk.f32.mxu1 %vm1508_vm7, %v1507_v6 }
  0x32   :  { %v1669_v8 = vsel %vm127_vm4, 1.0, %v1507_v6  ;;  %v151_v9 = vmul.f32 %v1666_v7, %v1618_v22  ;;  %v91_v10 = vand.u32 15, %v65_v5  ;;  %v342_v33 = vld [vmem:[%s1900_s7 + $0x40] sm:$0xff]  ;;  %v347_v41 = vld [vmem:[%s1900_s7 + $0x68] sm:$0xff]  ;;  %v349_v44 = vld [vmem:[%s1900_s7 + $0x78] sm:$0xff]  ;;  %vm332_vm8 = vcmask 1040384  }
  0x33   :  { %1275 = vmatpush1.bf16.msra.mxu0 %v1274_v31  ;;  %vm116_vm5 = vcmp.ne.s32.totalorder %v84_v4, 0  ;;  %v165_v11 = vmul.f32 %v1669_v8, %v1622_v23  ;;  %v341_v31 = vld [vmem:[%s1900_s7 + $0x38] sm:$0xff]  ;;  %v1731_v35 = vpack.c.bf16 %v343_v34, %v342_v33  ;;  %v611_v33 = vld [vmem:[#allocation5 + $0x120] sm:$0xff]  ;;  %v612_v34 = vld [vmem:[#allocation5 + $0x128] sm:$0xff]  ;;  %vm457_vm9 = vcmask 64512  }
  0x34   :  { %1276 = vmatprep.subr.bf16.mxu0 %v1505_v0  ;;  %v1676_v13 = vsel %vm116_vm5, 1.0, %v1507_v6  ;;  %vm129_vm6 = vcmp.ne.s32.totalorder %v91_v10, 15 }
  0x35   :  { %v153_v16 = vmul.f32 %v1676_v13, %v1631_v28  ;;  %v1683_v18 = vsel %vm129_vm6, 1.0, %v1507_v6  ;;  %v339_v28 = vld [vmem:[%s1900_s7 + $0x28] sm:$0xff] }
  0x36   :  { %v167_v22 = vmul.f32 %v1683_v18, %v1635_v29  ;;  %v1711_v29 = vpack.c.bf16 %v339_v28, %v338_v27  ;;  %v609_v28 = vld [vmem:[#allocation5 + $0x110] sm:$0xff] }
  0x37   :  { %1278 = vmatpush1.bf16.msra.mxu0 %v1277_v37  ;;  %v344_v37 = vld [vmem:[%s1900_s7 + $0x50] sm:$0xff] }
  0x38   :  { %1279 = vmatprep.subr.bf16.mxu0 %v1505_v0  ;;  %v1741_v39 = vpack.c.bf16 %v345_v38, %v344_v37  ;;  %v1367_v37 = vpack.c.bf16 %v612_v34, %v611_v33  ;;  %v613_v38 = vld [vmem:[#allocation5 + $0x130] sm:$0xff]  ;;  %v580_v33 = vld [vmem:[#allocation5 + $0x28] sm:$0xff] }
  0x39   :  { %v597_v34 = vld [vmem:[#allocation5 + $0xb0] sm:$0xff] }
  0x3b   :  { %1281 = vmatpush1.bf16.msra.mxu0 %v1280_v40  ;;  %v346_v40 = vld [vmem:[%s1900_s7 + $0x60] sm:$0xff] }
  0x3c   :  { %1282 = vmatprep.subr.bf16.mxu0 %v1505_v0  ;;  %v1751_v42 = vpack.c.bf16 %v347_v41, %v346_v40  ;;  %v614_v40 = vld [vmem:[#allocation5 + $0x138] sm:$0xff] }
  0x3d   :  { %v1371_v41 = vpack.c.bf16 %v614_v40, %v613_v38 }
  0x3f   :  { %1284 = vmatpush1.bf16.msra.mxu0 %v1283_v43  ;;  %v348_v43 = vld [vmem:[%s1900_s7 + $0x70] sm:$0xff] }
  0x40   :  { %1285 = vmatprep.subr.bf16.mxu0 %v1505_v0  ;;  %v1762_v45 = vpack.c.bf16 %v349_v44, %v348_v43  ;;  %v615_v43 = vld [vmem:[#allocation5 + $0x140] sm:$0xff]  ;;  %v616_v44 = vld [vmem:[#allocation5 + $0x148] sm:$0xff] }
  0x43   :  { %1287 = vmatpush1.bf16.msra.mxu0 %v1286_v46 }
  0x44   :  { %1288 = vmatprep.subr.bf16.mxu0 %v1505_v0 }
  0x47   :  { %1290 = vmatpush1.bf16.msra.mxu0 %v1289_v49 }
  0x48   :  { %1291 = vmatprep.subr.bf16.mxu0 %v1505_v0 }
  0x4b   :  { %1293 = vmatpush1.bf16.msra.mxu0 %v1292_v52 }
  0x4c   :  { %1294 = vmatprep.subr.bf16.mxu0 %v1505_v0 }
  0x4f   :  { %1296 = vmatpush1.bf16.msra.mxu0 %v1295_v55 }
  0x50   :  { %1297 = vmatprep.subr.bf16.mxu0 %v1505_v0 }
  0x53   :  { %1299 = vmatpush1.bf16.msra.mxu0 %v1298_v58 }
  0x54   :  { %1300 = vmatprep.subr.bf16.mxu0 %v1505_v0 }
  0x57   :  { %1302 = vmatpush1.bf16.msra.mxu0 %v1301_v61 }
  0x9a   :  { %v173_v12 = vpop.permute.xlu0 %172  ;;  %v177_v15 = vpop.permute.xlu1 %176 }
  0x9b   :  { %v185_v14 = vsel %vm184_vm1, %v151_v9, %v173_v12  ;;  %v187_v20 = vsel %vm184_vm1, %v153_v16, %v177_v15 }
  0x9c   :  { %290 = vmatmul.mubr.f32.vlgmr.msra.gmra.mrb[0].mxu0 %v185_v14 }
  0x9d   :  { %1042 = vmatprep.mubr.msk.f32.mxu0 %vm184_vm1, %v165_v11 }
  0x9e   :  { %v175_v17 = vpop.permute.xlu0 %174 }
  0x9f   :  { %v186_v19 = vsel %vm184_vm1, %v1613_v21, %v175_v17  ;;  %v179_v23 = vpop.permute.xlu1 %178  ;;  %v336_v21 = vld [vmem:[%s1900_s7 + $0x10] sm:$0xff] }
  0xa0   :  { %295 = vmatmul.mubr.f32.gmra.mrb[2].mxu0 %v186_v19  ;;  %v188_v24 = vsel %vm184_vm1, %v1639_v30, %v179_v23  ;;  %v340_v30 = vld [vmem:[%s1900_s7 + $0x30] sm:$0xff]  ;;  %v592_v23 = vld [vmem:[#allocation5 + $0x88] sm:$0xff] }
  0xa1   :  { %1043 = vmatprep.mubr.msk.f32.mxu0 %vm184_vm1, %v1626_v25  ;;  %v337_v25 = vld [vmem:[%s1900_s7 + $0x18] sm:$0xff]  ;;  %v1721_v32 = vpack.c.bf16 %v341_v31, %v340_v30 }
  0xa2   :  { %v1701_v26 = vpack.c.bf16 %v337_v25, %v336_v21  ;;  %v608_v25 = vld [vmem:[#allocation5 + $0x108] sm:$0xff]  ;;  %v610_v30 = vld [vmem:[#allocation5 + $0x118] sm:$0xff] }
  0xa3   :  { %v1363_v31 = vpack.c.bf16 %v610_v30, %v609_v28 }
  0xa4   :  { %300 = vmatmul.mubr.f32.gmra.mrb[4].mxu0 %v187_v20  ;;  %1308 = vmatpush3.bf16.msra.mxu1 %v1701_v26  ;;  %v1793_v20 = vld [vmem:[%s1901_s8] sm:$0xff] }
  0xa5   :  { %1044 = vmatprep.mubr.msk.f32.mxu0 %vm184_vm1, %v167_v22  ;;  %1309 = vmatprep.subr.bf16.mxu1 %v1505_v0  ;;  %v591_v22 = vld [vmem:[#allocation5 + $0x80] sm:$0xff] }
  0xa6   :  { %v1327_v21 = vpack.c.bf16 %v592_v23, %v591_v22  ;;  %v577_v23 = vld [vmem:[#allocation5 + $0x10] sm:$0xff] }
  0xa8   :  { %305 = vmatmul.mubr.f32.gmra.mrb[6].mxu0 %v188_v24  ;;  %1311 = vmatpush3.bf16.msra.mxu1 %v1711_v29  ;;  %v607_v24 = vld [vmem:[#allocation5 + $0x100] sm:$0xff] }
  0xa9   :  { %1312 = vmatprep.subr.bf16.mxu1 %v1505_v0  ;;  %v1359_v27 = vpack.c.bf16 %v608_v25, %v607_v24  ;;  %v578_v24 = vld [vmem:[#allocation5 + $0x18] sm:$0xff]  ;;  %v595_v25 = vld [vmem:[#allocation5 + $0xa0] sm:$0xff] }
  0xaa   :  { %v1333_v28 = vpack.c.bf16 %v578_v24, %v577_v23  ;;  %v621_v23 = vld [vmem:[#allocation5 + $0x170] sm:$0xff] }
  0xab   :  { %1360 = vmatprep.subr.bf16.mxu0 %v1359_v27 }
  0xac   :  { %1314 = vmatpush3.bf16.msra.mxu1 %v1721_v32  ;;  %1362 = vmatpush3.bf16.msra.mxu0 %v1359_v27  ;;  %v596_v27 = vld [vmem:[#allocation5 + $0xa8] sm:$0xff] }
  0xad   :  { %1315 = vmatprep.subr.bf16.mxu1 %v1505_v0  ;;  %1364 = vmatprep.subr.bf16.mxu0 %v1363_v31  ;;  %v1335_v30 = vpack.c.bf16 %v596_v27, %v595_v25  ;;  %v589_v25 = vld [vmem:[#allocation5 + $0x70] sm:$0xff]  ;;  %v590_v27 = vld [vmem:[#allocation5 + $0x78] sm:$0xff] }
  0xb0   :  { %1317 = vmatpush3.bf16.msra.mxu1 %v1731_v35  ;;  %1366 = vmatpush3.bf16.msra.mxu0 %v1363_v31  ;;  %v579_v31 = vld [vmem:[#allocation5 + $0x20] sm:$0xff] }
  0xb1   :  { %1318 = vmatprep.subr.bf16.mxu1 %v1505_v0  ;;  %1368 = vmatprep.subr.bf16.mxu0 %v1367_v37  ;;  %v1337_v38 = vpack.c.bf16 %v580_v33, %v579_v31  ;;  %v541_v31 = vsub.s32 1, %v1593_v2 }
  0xb4   :  { %1320 = vmatpush3.bf16.msra.mxu1 %v1741_v39  ;;  %1370 = vmatpush3.bf16.msra.mxu0 %v1367_v37  ;;  %v598_v37 = vld [vmem:[#allocation5 + $0xb8] sm:$0xff] }
  0xb5   :  { %1321 = vmatprep.subr.bf16.mxu1 %v1505_v0  ;;  %1372 = vmatprep.subr.bf16.mxu0 %v1371_v41  ;;  %v1339_v40 = vpack.c.bf16 %v598_v37, %v597_v34 }
  0xb8   :  { %1323 = vmatpush3.bf16.msra.mxu1 %v1751_v42  ;;  %1374 = vmatpush3.bf16.msra.mxu0 %v1371_v41  ;;  %v581_v41 = vld [vmem:[#allocation5 + $0x30] sm:$0xff] }
  0xb9   :  { %1324 = vmatprep.subr.bf16.mxu1 %v1505_v0 }
  0xbc   :  { %1326 = vmatpush3.bf16.msra.mxu1 %v1762_v45 }
  0xbd   :  { %1184 = vmatprep.subr.mxu1 %v1507_v6 }
 0x16f   :  { %v1767_v46 = vpop.f32.mrb[0].mxu0 }
 0x170   :  { %v293_v47 = vpop.f32.mrb[1].mxu0  ;;  %v319_v49 = vmul.f32 %v1767_v46, %v1767_v46 }
 0x171   :  { %v1375_v47 = vpack.c.bf16 %v616_v44, %v615_v43  ;;  %v582_v43 = vld [vmem:[#allocation5 + $0x38] sm:$0xff]  ;;  %v599_v44 = vld [vmem:[#allocation5 + $0xc0] sm:$0xff] }
 0x173   :  { %v1769_v48 = vpop.f32.mrb[2].mxu0  ;;  %1376 = vmatprep.subr.bf16.mxu0 %v1375_v47 }
 0x174   :  { %v310_v50 = vadd.f32 %v1769_v48, %v1767_v46  ;;  %v320_v51 = vmul.f32 %v1769_v48, %v1769_v48  ;;  %v298_v52 = vpop.f32.mrb[3].mxu0  ;;  %1378 = vmatpush3.bf16.msra.mxu0 %v1375_v47  ;;  %v600_v47 = vld [vmem:[#allocation5 + $0xc8] sm:$0xff] }
 0x176   :  { %v323_v53 = vadd.f32 %v320_v51, %v319_v49 }
 0x177   :  { %v1777_v54 = vpop.f32.mrb[4].mxu0 }
 0x178   :  { %v311_v55 = vadd.f32 %v310_v50, %v1777_v54  ;;  %v321_v56 = vmul.f32 %v1777_v54, %v1777_v54  ;;  %v303_v57 = vpop.f32.mrb[5].mxu0 }
 0x17a   :  { %v324_v58 = vadd.f32 %v323_v53, %v321_v56  ;;  %v1509_v56 = vmov 1966171168  }
 0x17b   :  { %v1782_v59 = vpop.f32.mrb[6].mxu0  ;;  %v430_v57 = vunpack.c.l.s4 %v1509_v56  ;;  %v602_v56 = vld [vmem:[#allocation5 + $0xd8] sm:$0xff] }
 0x17c   :  { %v312_v60 = vadd.f32 %v311_v55, %v1782_v59  ;;  %v322_v61 = vmul.f32 %v1782_v59, %v1782_v59  ;;  %v308_v62 = vpop.f32.mrb[7].mxu0 }
 0x17e   :  { %v313_v63 = vrot.slane %v312_v60, 4  ;;  %v325_v1 = vadd.f32 %v324_v58, %v322_v61  ;;  %v431_v58 = vunpack.c.0.s8 %v430_v57  ;;  %v617_v57 = vld [vmem:[#allocation5 + $0x150] sm:$0xff] }
 0x180   :  { %v314_v3 = vadd.f32 %v313_v63, %v312_v60  ;;  %v326_v4 = vrot.slane %v325_v1, 4  ;;  %v1797_v60 = vsub.s32 %v431_v58, %v1593_v2 }
 0x182   :  { %v315_v5 = vrot.slane %v314_v3, 2  ;;  %v327_v9 = vadd.f32 %v326_v4, %v325_v1  ;;  %v425_v1 = vld [vmem:[%s1895_s2] sm:$0x1] }
 0x184   :  { %v316_v10 = vadd.f32 %v315_v5, %v314_v3  ;;  %v328_v11 = vrot.slane %v327_v9, 2  ;;  %v446_v5 = vld [vmem:[%s1896_s3] sm:$0x1] }
 0x186   :  { %v317_v12 = vrot.slane %v316_v10, 1  ;;  %v329_v14 = vadd.f32 %v328_v11, %v327_v9  ;;  %v575_v11 = vld [vmem:[#allocation5] sm:$0xff] }
 0x188   :  { %v330_v15 = vrot.slane %v329_v14, 1  ;;  %v318_v16 = vadd.f32 %v317_v12, %v316_v10  ;;  %v1808_v10 = vsub.s32 0, %v1593_v2  ;;  %v576_v12 = vld [vmem:[#allocation5 + $0x8] sm:$0xff] }
 0x18a   :  { %v331_v17 = vadd.f32 %v330_v15, %v329_v14  ;;  %v593_v15 = vld [vmem:[#allocation5 + $0x90] sm:$0xff] }
 0x18c   :  { %v333_v19 = vsel %vm332_vm8, %v318_v16, %v331_v17  ;;  %v594_v16 = vld [vmem:[#allocation5 + $0x98] sm:$0xff] }
 0x18d   :  { %1182 = vmatmul.mubr.f32.vlgmr.msra.gmra.mrb[0].mxu1 %v333_v19  ;;  %v1329_v19 = vpack.c.bf16 %v576_v12, %v575_v11  ;;  %v1331_v22 = vpack.c.bf16 %v594_v16, %v593_v15  ;;  %v620_v12 = vld [vmem:[#allocation5 + $0x168] sm:$0xff] }
 0x18e   :  { %1186 = vmatprep.mubr.msk.f32.mxu1 %vm1508_vm7, %v1507_v6  ;;  %1185 = vmatpush3.msra.mxu1 %v1793_v20  ;;  %v588_v15 = vld [vmem:[#allocation5 + $0x68] sm:$0xff] }
 0x18f   :  { %1328 = vmatprep.subr.bf16.mxu1 %v1327_v21 }
 0x260   :  { %v416_v49 = vpop.f32.mrb[0].mxu1 }
 0x261   :  { %v420_v50 = vmul.f32 %v416_v49, %v416_v49  ;;  %v1183_v51 = vpop.f32.mrb[1].mxu1 }
 0x262   :  { %v583_v51 = vld [vmem:[#allocation5 + $0x40] sm:$0xff] }
 0x263   :  { %v422_v52 = vrot.slane %v420_v50, 7  ;;  %v1343_v50 = vpack.c.bf16 %v600_v47, %v599_v44 }
 0x265   :  { %v424_v53 = vsub.f32 %v416_v49, %v422_v52  ;;  %v584_v52 = vld [vmem:[#allocation5 + $0x48] sm:$0xff] }
 0x267   :  { %v426_v55 = vadd.f32 1e-05, %v424_v53  ;;  %v1345_v53 = vpack.c.bf16 %v584_v52, %v583_v51 }
 0x269   :  { %1425 = vrsqrt.f32 %v426_v55  ;;  %v601_v55 = vld [vmem:[#allocation5 + $0xd0] sm:$0xff] }
 0x26a   :  { %v1347_v58 = vpack.c.bf16 %v602_v56, %v601_v55 }
 0x273   :  { %v1426_v61 = vpop.eup %1425 }
 0x274   :  { %v435_v62 = vrot.slane %v1426_v61, %v1797_v60  ;;  %v618_v61 = vld [vmem:[#allocation5 + $0x158] sm:$0xff] }
 0x276   :  { %v436_v63 = vcombine.high %v435_v62, %v435_v62  ;;  %v585_v62 = vld [vmem:[#allocation5 + $0x50] sm:$0xff] }
 0x278   :  { %v443_v3 = vrot.slane %v436_v63, %v1797_v60  ;;  %v586_v63 = vld [vmem:[#allocation5 + $0x58] sm:$0xff] }
 0x27a   :  { %v445_v4 = vmul.f32 %v443_v3, %v425_v1  ;;  %v1379_v1 = vpack.c.bf16 %v618_v61, %v617_v57  ;;  %v1349_v3 = vpack.c.bf16 %v586_v63, %v585_v62 }
 0x27c   :  { %v447_v9 = vmul.f32 %v445_v4, %v416_v49  ;;  %v1341_v49 = vpack.c.bf16 %v582_v43, %v581_v41  ;;  %1380 = vmatprep.subr.bf16.mxu0 %v1379_v1 }
 0x27d   :  { %1382 = vmatpush3.bf16.msra.mxu0 %v1379_v1 }
 0x27e   :  { %v448_v14 = vsub.f32 %v446_v5, %v447_v9  ;;  %v604_v5 = vld [vmem:[#allocation5 + $0xe8] sm:$0xff]  ;;  %v619_v9 = vld [vmem:[#allocation5 + $0x160] sm:$0xff] }
 0x27f   :  { %v1383_v16 = vpack.c.bf16 %v620_v12, %v619_v9 }
 0x280   :  { %v453_v17 = vrot.slane %v448_v14, %v1808_v10  ;;  %v587_v14 = vld [vmem:[#allocation5 + $0x60] sm:$0xff] }
 0x281   :  { %1384 = vmatprep.subr.bf16.mxu0 %v1383_v16 }
 0x282   :  { %v455_v21 = vsel %vm332_vm8, %v445_v4, %v453_v17  ;;  %v603_v4 = vld [vmem:[#allocation5 + $0xe0] sm:$0xff]  ;;  %v1353_v17 = vpack.c.bf16 %v588_v15, %v587_v14  ;;  %1386 = vmatpush3.bf16.msra.mxu0 %v1383_v16 }
 0x283   :  { %1187 = vmatmul.mubr.msk.f32.vlgmr.msra.gmra.mrb[2].mxu1 %vm457_vm9, %v455_v21  ;;  %v1351_v11 = vpack.c.bf16 %v604_v5, %v603_v4  ;;  %v622_v21 = vld [vmem:[#allocation5 + $0x178] sm:$0xff] }
 0x284   :  { %1330 = vmatpush3.bf16.msra.mxu1 %v1329_v19  ;;  %v605_v19 = vld [vmem:[#allocation5 + $0xf0] sm:$0xff] }
 0x285   :  { %1332 = vmatprep.subr.bf16.mxu1 %v1331_v22  ;;  %v606_v22 = vld [vmem:[#allocation5 + $0xf8] sm:$0xff] }
 0x286   :  { %v1355_v24 = vpack.c.bf16 %v606_v22, %v605_v19 }
 0x288   :  { %1334 = vmatpush3.bf16.msra.mxu1 %v1333_v28  ;;  %v1387_v28 = vpack.c.bf16 %v622_v21, %v621_v23 }
 0x289   :  { %1336 = vmatprep.subr.bf16.mxu1 %v1335_v30  ;;  %v1357_v30 = vpack.c.bf16 %v590_v27, %v589_v25 }
 0x28a   :  { %1388 = vmatprep.subr.bf16.mxu0 %v1387_v28 }
 0x28b   :  { %1390 = vmatpush3.bf16.msra.mxu0 %v1387_v28 }
 0x28c   :  { %1338 = vmatpush3.bf16.msra.mxu1 %v1337_v38  ;;  %1262 = vmatprep.subr.mxu0 %v1507_v6 }
 0x28d   :  { %1340 = vmatprep.subr.bf16.mxu1 %v1339_v40 }
 0x290   :  { %1342 = vmatpush3.bf16.msra.mxu1 %v1341_v49 }
 0x291   :  { %1344 = vmatprep.subr.bf16.mxu1 %v1343_v50 }
 0x294   :  { %1346 = vmatpush3.bf16.msra.mxu1 %v1345_v53 }
 0x295   :  { %1348 = vmatprep.subr.bf16.mxu1 %v1347_v58 }
 0x298   :  { %1350 = vmatpush3.bf16.msra.mxu1 %v1349_v3 }
 0x299   :  { %1352 = vmatprep.subr.bf16.mxu1 %v1351_v11 }
 0x29c   :  { %1354 = vmatpush3.bf16.msra.mxu1 %v1353_v17 }
 0x29d   :  { %1356 = vmatprep.subr.bf16.mxu1 %v1355_v24 }
 0x2a0   :  { %1358 = vmatpush3.bf16.msra.mxu1 %v1357_v30 }
 0x2a1   :  { %1391 = vmatprep.subr.bf16.mxu1 %v1505_v0 }
 0x356   :  { %v527_v33 = vpop.f32.mrb[2].mxu1 }
 0x357   :  { %v534_v34 = vrot.slane %v527_v33, %v1808_v10  ;;  %v1188_v37 = vpop.f32.mrb[3].mxu1  ;;  %v542_v38 = vrot.slane %v527_v33, %v541_v31 }
 0x359   :  { %v536_v40 = vmul.f32 %v534_v34, %v1769_v48  ;;  %v537_v41 = vmul.f32 %v534_v34, %v1777_v54  ;;  %v538_v43 = vmul.f32 %v534_v34, %v1782_v59  ;;  %v535_v44 = vmul.f32 %v534_v34, %v1767_v46 }
 0x35b   :  { %v544_v47 = vadd.f32 %v542_v38, %v536_v40  ;;  %v545_v49 = vadd.f32 %v542_v38, %v537_v41  ;;  %v546_v50 = vadd.f32 %v542_v38, %v538_v43  ;;  %v543_v51 = vadd.f32 %v542_v38, %v535_v44 }
 0x35d   :  { %v548_v52 = vmax.f32 %v544_v47, 0.0  ;;  %v549_v53 = vmax.f32 %v545_v49, 0.0  ;;  %v550_v55 = vmax.f32 %v546_v50, 0.0  ;;  %v547_v56 = vmax.f32 %v543_v51, 0.0 }
 0x35f   :  { %v565_v57 = vrot.slane %v549_v53, 1  ;;  %v551_v58 = vrot.slane %v547_v56, 7  ;;  %687 = vmatprep.mubr.f32.mxu1 %v547_v56  ;;  %v563_v61 = vrot.slane %v547_v56, 1  ;;  %v564_v62 = vrot.slane %v548_v52, 1 }
 0x360   :  { %v554_v48 = vrot.slane %v550_v55, 7  ;;  %v566_v63 = vrot.slane %v550_v55, 1  ;;  %v552_v54 = vrot.slane %v548_v52, 7  ;;  %v553_v1 = vrot.slane %v549_v53, 7 }
 0x361   :  { %v568_v46 = vsel %vm159_vm0, %v564_v62, %v565_v57  ;;  %v569_v59 = vsel %vm159_vm0, %v563_v61, %v564_v62 }
 0x362   :  { %v572_v3 = vmul.f32 %v1669_v8, %v568_v46  ;;  %1221 = vmatprep.mubr.f32.mxu0 %v569_v59  ;;  %v558_v4 = vsel %vm146_vm2, %v554_v48, %v551_v58  ;;  %v567_v5 = vsel %vm159_vm0, %v565_v57, %v566_v63  ;;  %v557_v9 = vsel %vm146_vm2, %v551_v58, %v552_v54 }
 0x363   :  { %v559_v11 = vmul.f32 %v1666_v7, %v558_v4  ;;  %v570_v12 = vsel %vm159_vm0, %v566_v63, %v563_v61  ;;  %v556_v14 = vsel %vm146_vm2, %v552_v54, %v553_v1  ;;  %v555_v8 = vsel %vm146_vm2, %v553_v1, %v554_v48 }
 0x364   :  { %1222 = vmatmul.mubr.f32.vlgmr.msra.gmra.mrb[8].mxu0 %v572_v3  ;;  %v574_v15 = vmul.f32 %v1683_v18, %v570_v12  ;;  %v561_v7 = vmul.f32 %v1676_v13, %v556_v14  ;;  %v912_v12 = vld [vmem:[%s1899_s6] sm:$0x1] }
 0x365   :  { %688 = vmatmul.mubr.f32.vlgmr.msra.gmra.mrb[4].mxu1 %v559_v11  ;;  %1224 = vmatprep.mubr.f32.mxu0 %v567_v5  ;;  %v891_v5 = vld [vmem:[%s1898_s5] sm:$0x1]  ;;  %s1510_s5 = smov [#allocation7]  }
 0x366   :  { %692 = vmatprep.mubr.f32.mxu1 %v548_v52  ;;  %1393 = vmatpush3.bf16.msra.mxu1 %v1648_v36  ;;  %s1024_s6 = sshll.u32 %s1510_s5, 4  ;;  %s1025_s6 = int_to_ptr.vmem [resolvable:$true] %s1024_s6 }
 0x367   :  { %1394 = vmatprep.subr.bf16.mxu1 %v1505_v0  ;;  %1263 = vmatpush3.msra.mxu0 %v1793_v20  ;;  %s1473_s16 = scalar_lea.vmem %s1025_s6, 512  ;;  %p1478_p3 = scmp.lt.s32.totalorder %s1025_s6, %s1025_s6 }
 0x368   :  { %1225 = vmatmul.mubr.f32.gmra.mrb[10].mxu0 %v574_v15  ;;  %p1474_p2 = scmp.ne.s32.totalorder %s1025_s6, %s1473_s16  ;;  %p1479_p4 = scmp.lt.s32.totalorder %s1473_s16, %s1473_s16 }
 0x369   :  { %693 = vmatmul.mubr.f32.gmra.mrb[6].mxu1 %v557_v9  ;;  %1264 = vmatprep.mubr.msk.f32.mxu0 %vm1508_vm7, %v1507_v6 }
 0x36a   :  { %697 = vmatprep.mubr.f32.mxu1 %v549_v53  ;;  %1396 = vmatpush3.bf16.msra.mxu1 %v1701_v26  ;;  %p1480_p5 = por %p1479_p4, %p1478_p3 }
 0x36b   :  { %1397 = vmatprep.subr.bf16.mxu1 %v1505_v0 }
 0x36c   :  { %p1481_p6 = pnand %p1480_p5, %p1474_p2 }
 0x36d   :  { %698 = vmatmul.mubr.f32.gmra.mrb[8].mxu1 %v561_v7 }
 0x36e   :  { %702 = vmatprep.mubr.f32.mxu1 %v550_v55  ;;  %1399 = vmatpush3.bf16.msra.mxu1 %v1711_v29 }
 0x36f   :  { %1400 = vmatprep.subr.bf16.mxu1 %v1505_v0 }
 0x371   :  { %703 = vmatmul.mubr.f32.gmra.mrb[10].mxu1 %v555_v8 }
 0x372   :  { %1402 = vmatpush3.bf16.msra.mxu1 %v1721_v32  ;;  %1259 = vmatprep.mubr.msk.f32.mxu1 %vm1508_vm7, %v1507_v6 }
 0x373   :  { %1403 = vmatprep.subr.bf16.mxu1 %v1505_v0 }
 0x376   :  { %1405 = vmatpush3.bf16.msra.mxu1 %v1731_v35 }
 0x377   :  { %1406 = vmatprep.subr.bf16.mxu1 %v1505_v0 }
 0x37a   :  { %1408 = vmatpush3.bf16.msra.mxu1 %v1741_v39 }
 0x37b   :  { %1409 = vmatprep.subr.bf16.mxu1 %v1505_v0 }
 0x37e   :  { %1411 = vmatpush3.bf16.msra.mxu1 %v1751_v42 }
 0x37f   :  { %1412 = vmatprep.subr.bf16.mxu1 %v1505_v0 }
 0x382   :  { %1414 = vmatpush3.bf16.msra.mxu1 %v1762_v45 }
 0x437   :  { %v1223_v36 = vpop.f32.mrb[8].mxu0 }
 0x438   :  { %v1098_v13 = vpop.f32.mrb[4].mxu1  ;;  %v774_v18 = vpop.f32.mrb[9].mxu0 }
 0x439   :  { %v1099_v6 = vpop.f32.mrb[5].mxu1 }
 0x43a   :  { %v1100_v26 = vadd.f32 %v1099_v6, %v1098_v13 }
 0x43b   :  { %v1226_v29 = vpop.f32.mrb[10].mxu0 }
 0x43c   :  { %v775_v32 = vadd.f32 %v1100_v26, %v774_v18  ;;  %v1101_v35 = vpop.f32.mrb[6].mxu1  ;;  %v784_v20 = vpop.f32.mrb[11].mxu0 }
 0x43d   :  { %v1102_v16 = vpop.f32.mrb[7].mxu1 }
 0x43e   :  { %v1103_v17 = vadd.f32 %v1102_v16, %v1101_v35  ;;  %v802_v45 = vmul.f32 %v775_v32, %v775_v32 }
 0x440   :  { %v780_v39 = vadd.f32 %v1223_v36, %v1103_v17  ;;  %v1104_v19 = vpop.f32.mrb[8].mxu1 }
 0x441   :  { %v1105_v22 = vpop.f32.mrb[9].mxu1 }
 0x442   :  { %v1106_v23 = vadd.f32 %v1105_v22, %v1104_v19  ;;  %v803_v42 = vmul.f32 %v780_v39, %v780_v39  ;;  %v793_v25 = vadd.f32 %v780_v39, %v775_v32 }
 0x444   :  { %v785_v24 = vadd.f32 %v1106_v23, %v784_v20  ;;  %v1107_v0 = vpop.f32.mrb[10].mxu1  ;;  %v806_v30 = vadd.f32 %v803_v42, %v802_v45 }
 0x445   :  { %v1108_v21 = vpop.f32.mrb[11].mxu1 }
 0x446   :  { %v804_v27 = vmul.f32 %v785_v24, %v785_v24  ;;  %v1109_v28 = vadd.f32 %v1108_v21, %v1107_v0  ;;  %v794_v33 = vadd.f32 %v793_v25, %v785_v24 }
 0x448   :  { %v790_v34 = vadd.f32 %v1226_v29, %v1109_v28  ;;  %v807_v37 = vadd.f32 %v806_v30, %v804_v27 }
 0x44a   :  { %v795_v38 = vadd.f32 %v794_v33, %v790_v34  ;;  %v805_v40 = vmul.f32 %v790_v34, %v790_v34 }
 0x44c   :  { %v796_v41 = vrot.slane %v795_v38, 4  ;;  %v808_v43 = vadd.f32 %v807_v37, %v805_v40 }
 0x44e   :  { %v797_v44 = vadd.f32 %v796_v41, %v795_v38  ;;  %v809_v47 = vrot.slane %v808_v43, 4 }
 0x450   :  { %v798_v49 = vrot.slane %v797_v44, 2  ;;  %v810_v50 = vadd.f32 %v809_v47, %v808_v43 }
 0x452   :  { %v799_v51 = vadd.f32 %v798_v49, %v797_v44  ;;  %v811_v52 = vrot.slane %v810_v50, 2 }
 0x454   :  { %v800_v53 = vrot.slane %v799_v51, 1  ;;  %v812_v55 = vadd.f32 %v811_v52, %v810_v50 }
 0x456   :  { %v813_v56 = vrot.slane %v812_v55, 1  ;;  %v801_v57 = vadd.f32 %v800_v53, %v799_v51 }
 0x458   :  { %v814_v58 = vadd.f32 %v813_v56, %v812_v55 }
 0x45a   :  { %v815_v61 = vsel %vm332_vm8, %v801_v57, %v814_v58 }
 0x45b   :  { %1260 = vmatmul.mubr.f32.vlgmr.msra.gmra.mrb[12].mxu1 %v815_v61 }
 0x52e   :  { %v882_v62 = vpop.f32.mrb[12].mxu1 }
 0x52f   :  { %v886_v48 = vmul.f32 %v882_v62, %v882_v62  ;;  %v1261_v63 = vpop.f32.mrb[13].mxu1 }
 0x531   :  { %v888_v54 = vrot.slane %v886_v48, 7 }
 0x533   :  { %v890_v1 = vsub.f32 %v882_v62, %v888_v54 }
 0x535   :  { %v892_v46 = vadd.f32 1e-05, %v890_v1 }
 0x537   :  { %1427 = vrsqrt.f32 %v892_v46 }
 0x541   :  { %v1428_v59 = vpop.eup %1427 }
 0x542   :  { %v901_v3 = vrot.slane %v1428_v59, %v1797_v60 }
 0x544   :  { %v902_v4 = vcombine.high %v901_v3, %v901_v3 }
 0x546   :  { %v909_v9 = vrot.slane %v902_v4, %v1797_v60 }
 0x548   :  { %v911_v11 = vmul.f32 %v909_v9, %v891_v5 }
 0x54a   :  { %v913_v14 = vmul.f32 %v911_v11, %v882_v62 }
 0x54c   :  { %v914_v8 = vsub.f32 %v912_v12, %v913_v14 }
 0x54e   :  { %v919_v15 = vrot.slane %v914_v8, %v1808_v10 }
 0x550   :  { %v921_v7 = vsel %vm332_vm8, %v911_v11, %v919_v15 }
 0x551   :  { %1265 = vmatmul.mubr.msk.f32.vlgmr.msra.gmra.mrb[12].mxu0 %vm457_vm9, %v921_v7 }
 0x624   :  { %v991_v36 = vpop.f32.mrb[12].mxu0 }
 0x625   :  { %v998_v13 = vrot.slane %v991_v36, %v1808_v10  ;;  %v1266_v18 = vpop.f32.mrb[13].mxu0  ;;  %v1006_v60 = vrot.slane %v991_v36, %v541_v31 }
 0x627   :  { %v999_v6 = vmul.f32 %v998_v13, %v775_v32  ;;  %v1000_v26 = vmul.f32 %v998_v13, %v780_v39  ;;  %v1001_v29 = vmul.f32 %v998_v13, %v785_v24  ;;  %v1002_v35 = vmul.f32 %v998_v13, %v790_v34 }
 0x629   :  { %v1007_v20 = vadd.f32 %v1006_v60, %v999_v6  ;;  %v1008_v16 = vadd.f32 %v1006_v60, %v1000_v26  ;;  %v1009_v17 = vadd.f32 %v1006_v60, %v1001_v29  ;;  %v1010_v19 = vadd.f32 %v1006_v60, %v1002_v35 }
 0x62b   :  { %v1011_v22 = vmax.f32 %v1007_v20, 0.0  ;;  %v1012_v23 = vmax.f32 %v1008_v16, 0.0  ;;  %v1013_v42 = vmax.f32 %v1009_v17, 0.0  ;;  %v1014_v0 = vmax.f32 %v1010_v19, 0.0 }
 0x62d   :  { %1015 = vst [vmem:[#allocation7] sm:$0xff] %v1011_v22  ;;  %1016 = vst [vmem:[#allocation7 + $0x8] sm:$0xff] %v1012_v23 }
 0x62e   :  { %1017 = vst [vmem:[#allocation7 + $0x10] sm:$0xff] %v1013_v42  ;;  %1018 = vst [vmem:[#allocation7 + $0x18] sm:$0xff] %v1014_v0 }
 0x62f   :  { %1484 = shalt.err (!%p1481_p6)
}
 0x630   :  { %s1485_s18 = scalar_lea.hbm %s1902_s9, 512 }
 0x631   :  { %p1486_p7 = scmp.ne.s32.totalorder %s1902_s9, %s1485_s18  ;;  %p1489_p8 = scmp.lt.u32.totalorder %s1485_s18, %s1902_s9 }
 0x633   :  { %p1491_p9 = pnand %p1489_p8, %p1486_p7 }
 0x635   :  { %1494 = shalt.err (!%p1491_p9)
}
 0x636   :  { %1030 = dma.vmem_to_hbm [thread:$0]  %s1025_s6, 512, %s1902_s9, [#allocation4], %s1502_s19, %s1502_s19, %s1503_s20  }
 0x637   :  { %1499 = dma.done.wait [#allocation4], 512  }
 0x638   :  { %1500 = vsyncadd [#allocation4], 4294966784 }
 0x639   :  { %1034 = vsyncpa [#allocation3], 1 }
 0x63a   :  { %1035 = vsyncpa [#allocation6], 1 }
 0x63b   :  { %1036 = vsyncpa [#allocation4], 1 }

</bundles_post_ra>
